<compile_context>
chip_gen: v7x
topology: tpu7x:2x2x1
jax: 0.10.0
libtpu: 0.0.40
codegen_flags: <defaults>
</compile_context>

<pallas_src>
import functools

import jax
import jax.numpy as jnp
from jax import lax
from jax.experimental import pallas as pl
from jax.experimental.pallas import tpu as pltpu


def _cheb_kernel(g_ref, x_ref, w_ref, b_ref, o_ref, *, kp1: int,
                 normalize: bool, lap_dtype):
    """One grid step == one block of `bt` batch elements.

    g_ref: [Bt, N, N]          adjacency (bf16 or f32 as stored in HBM)
    x_ref: [Bt, N, Cin]        node features (f32)
    w_ref: [(K+1)*Cin, Cout]   flattened Chebyshev weights (grid-invariant)
    b_ref: [1, Cout]           bias (grid-invariant)
    o_ref: [Bt, N, Cout]
    """
    bt, n, _ = g_ref.shape
    cin = x_ref.shape[-1]
    cout = o_ref.shape[-1]

    # Boolean diagonal selector (no dense f32 identity carried as a value).
    diag = (lax.broadcasted_iota(jnp.int32, (n, n), 0)
            == lax.broadcasted_iota(jnp.int32, (n, n), 1))

    # ---- Laplacian (matches ChebConv.get_laplacian), f32 arithmetic --------
    gf = g_ref[...].astype(jnp.float32)                 # upcast once (no-op if f32)
    deg = jnp.sum(gf, axis=-1, keepdims=True)           # [Bt, N, 1]
    if normalize:
        d = lax.rsqrt(deg)                              # 0 -> inf, <0 -> nan (== deg**-0.5)
        d = jnp.where(jnp.isnan(d), 0.0, d)             # torch zeroes only NaN in D
        # diag(d) @ A @ diag(d) == elementwise row/col scaling (VPU, no MXU);
        # gf is consumed here and never referenced again (low live pressure).
        lap = gf * d * jnp.swapaxes(d, -1, -2)
        lap = jnp.where(diag, 1.0 - lap, -lap)          # I - D^-1/2 A D^-1/2
    else:
        rs = jnp.where(jnp.isnan(deg), 0.0, deg)
        lap = jnp.where(diag, rs - gf, -gf)             # diag(deg) - A
    # Single fused full-matrix nan/inf cleanup: kept on the full [N,N] matrix
    # (not the degree vector) for exact parity on degenerate zero-degree rows.
    lap = jnp.where(jnp.isnan(lap) | jnp.isinf(lap), 0.0, lap)
    lap = lap.astype(lap_dtype)                         # bf16 into the MXU by default

    def bmm(t):                                         # L @ t with f32 accumulation
        return jnp.einsum('bij,bjc->bic', lap, t.astype(lap_dtype),
                          preferred_element_type=jnp.float32)

    # ---- Chebyshev recurrence + in-loop weight accumulation ----------------
    #   acc += Tx_k @ W_k : keeps only Tx_{k-1}/Tx_{k-2} and one [Bt,N,Cout]
    #   accumulator live (no concat of narrow lanes).
    w = w_ref[...]                                      # [(K+1)*Cin, Cout] f32
    x = x_ref[...]                                      # [Bt, N, Cin] f32

    def proj(tx_k, k):                                  # Tx_k @ W_k (Cin-deep, f32)
        wk = w[k * cin:(k + 1) * cin, :]                # static slice
        r = jnp.dot(tx_k.reshape(bt * n, cin), wk,
                    preferred_element_type=jnp.float32)
        return r.reshape(bt, n, cout)

    acc = proj(x, 0)                                    # k = 0: T_0 = I
    if kp1 >= 2:
        tx_prev2 = x
        tx_prev = bmm(x)                                # Tx_1 = L x
        acc = acc + proj(tx_prev, 1)
        for k in range(2, kp1):                         # static unroll (K is small)
            tx_new = 2.0 * bmm(tx_prev) - tx_prev2
            acc = acc + proj(tx_new, k)
            tx_prev2, tx_prev = tx_prev, tx_new

    # TODO(synk): lane-dense store (fold N*Cout onto the lane axis, or compute
    # the accumulator transposed [Bt,Cout,N] and transpose in the wrapper) --
    # documented single-digit-% store-side win, skipped to keep lowering simple.
    o_ref[...] = (acc + b_ref[...]).astype(o_ref.dtype)


def _pick_bt(b, n, graph_bytes, lap_bytes, budget_bytes):
    """Largest divisor of b whose per-step VMEM working set fits the budget,
    capped so the 'parallel' grid keeps >= 2 steps (megacore + pipelining)."""
    # Dominant [N,N] terms per batch element per grid step:
    #   2x double-buffered graph input block : 2 * gb * N^2
    #   f32 Laplacian intermediates (~2 live): 8 * N^2
    #   resident L in matmul dtype           : lb * N^2
    per_b = n * n * (2 * graph_bytes + 8 + lap_bytes)
    bt = int(max(1, min(b, budget_bytes // max(per_b, 1))))
    if b >= 2:
        bt = min(bt, max(1, b // 2))    # never collapse the grid to one step
    while b % bt:
        bt -= 1
    return bt, per_b


def cheb_conv(graph, x, weight, bias, *, normalize=True, use_bf16=True, bt=None):
    """graph [B,N,N] f32, x [B,N,Cin] f32, weight [K+1,Cin,Cout], bias [1,Cout]
    -> [B,N,Cout] f32.

    use_bf16=True (default): adjacency stored/DMAd as bf16 (halves the dominant
    HBM read and VMEM block) and the Laplacian feeds the MXU as bf16 with f32
    accumulation.  use_bf16=False is the tight-tolerance f32 opt-out.
    """
    b, n, _ = graph.shape
    cin = x.shape[-1]
    kp1, _, cout = weight.shape

    graph_dtype = jnp.bfloat16 if use_bf16 else jnp.float32
    lap_dtype = jnp.bfloat16 if use_bf16 else jnp.float32
    gb = jnp.dtype(graph_dtype).itemsize
    lb = jnp.dtype(lap_dtype).itemsize

    # VMEM budget: 44 MiB leaves headroom inside v7x's 64 MiB physical VMEM and
    # is far below v5e/v6e's 128 MiB physical.
    budget = 44 * 1024 * 1024
    auto_bt, per_b = _pick_bt(b, n, gb, lb, budget)
    if bt is None:
        bt = auto_bt
    assert b % bt == 0, (b, bt)

    # Explicit scoped-VMEM limit (defaults: 16 MiB v5e / 32 MiB v6e, v7x).
    est = bt * per_b + 8 * bt * n * (cin * (kp1 + 1) + cout) * 4
    vmem_limit = int(min(56 * 1024 * 1024, max(32 * 1024 * 1024, est * 3 // 2)))

    # Flatten weights so per-order W_k is a static row slice inside the kernel.
    w_flat = weight.reshape(kp1 * cin, cout).astype(jnp.float32)
    bias2d = bias.reshape(1, cout).astype(jnp.float32)
    graph_in = graph.astype(graph_dtype)   # bf16 in HBM: halves graph DMA bytes

    kernel = functools.partial(_cheb_kernel, kp1=kp1, normalize=normalize,
                               lap_dtype=lap_dtype)

    # TODO(synk): for N large enough that one batch's [N,N] block blows the
    # budget (N >~ 2k on v7x), add a row-tile grid axis over the graph
    # (block [bt, tn, N], tn a multiple of 256 on v6e/v7x), precompute
    # d = rsqrt(rowsum) in the wrapper as a [B,1,N] input, stage the bf16
    # Laplacian once (avoid (K-1)x graph re-reads), carry Tx_{k-1}/Tx_{k-2}
    # in VMEM scratch with k as an inner 'arbitrary' axis, and sweep
    # pipeline_mode=pl.Buffered(3) on the graph BlockSpec.
    return pl.pallas_call(
        kernel,
        out_shape=jax.ShapeDtypeStruct((b, n, cout), jnp.float32),
        grid=(b // bt,),
        in_specs=[
            pl.BlockSpec((bt, n, n), lambda i: (i, 0, 0)),
            pl.BlockSpec((bt, n, cin), lambda i: (i, 0, 0)),
            pl.BlockSpec((kp1 * cin, cout), lambda i: (0, 0)),   # grid-invariant
            pl.BlockSpec((1, cout), lambda i: (0, 0)),           # grid-invariant
        ],
        out_specs=pl.BlockSpec((bt, n, cout), lambda i: (i, 0, 0)),
        compiler_params=pltpu.CompilerParams(
            dimension_semantics=("parallel",),
            vmem_limit_bytes=vmem_limit),
    )(graph_in, x, w_flat, bias2d)


def cheb_conv_ref(graph, x, weight, bias, *, normalize=True):
    """Pure-JAX reference with identical semantics (for validation)."""
    b, n, _ = graph.shape
    kp1 = weight.shape[0]
    eye = jnp.eye(n, dtype=jnp.float32)
    rowsum = graph.sum(-1)                                  # [B, N]
    if normalize:
        d = 1.0 / jnp.sqrt(rowsum)
        d = jnp.where(jnp.isnan(d), 0.0, d)
        dm = jax.vmap(jnp.diag)(d)
        lap = eye[None] - dm @ graph @ dm
    else:
        rs = jnp.where(jnp.isnan(rowsum), 0.0, rowsum)
        lap = jax.vmap(jnp.diag)(rs) - graph
    lap = jnp.where(jnp.isnan(lap) | jnp.isinf(lap), 0.0, lap)

    ts = [jnp.broadcast_to(eye, (b, n, n)), lap]
    for _ in range(2, kp1):
        ts.append(2.0 * jnp.einsum('bij,bjk->bik', lap, ts[-1]) - ts[-2])
    ts = jnp.stack(ts[:kp1], axis=0)                        # [K+1, B, N, N]
    res = jnp.einsum('kbnm,bmc->kbnc', ts, x)
    res = jnp.einsum('kbnc,kco->kbno', res, weight)
    return res.sum(0) + bias.reshape(1, 1, -1)


if __name__ == "__main__":
    B, N, IN_C, OUT_C, K = 2, 16, 4, 8, 3   # module stores K+1 = 4 Chebyshev orders
    KP1 = K + 1

    key = jax.random.PRNGKey(0)
    kg, kx, kw = jax.random.split(key, 3)

    # Strictly positive adjacency -> well-defined normalized Laplacian.
    graph = jax.random.uniform(kg, (B, N, N), dtype=jnp.float32, minval=0.1, maxval=1.0)
    x = jax.random.normal(kx, (B, N, IN_C), dtype=jnp.float32)

    # Deterministic xavier_normal_ for weight of torch-shape [K+1, 1, in_c, out_c]:
    #   fan_in = 1*in_c*out_c, fan_out = (K+1)*in_c*out_c, std = sqrt(2/(fan_in+fan_out))
    fan_in = 1 * IN_C * OUT_C
    fan_out = KP1 * IN_C * OUT_C
    std = (2.0 / (fan_in + fan_out)) ** 0.5
    weight = std * jax.random.normal(kw, (KP1, IN_C, OUT_C), dtype=jnp.float32)
    bias = jnp.zeros((1, OUT_C), dtype=jnp.float32)         # init.zeros_

    ref = cheb_conv_ref(graph, x, weight, bias, normalize=True)

    # f32 opt-out path (tight tolerance), batch-fused single grid step.
    out_f32 = cheb_conv(graph, x, weight, bias, normalize=True,
                        use_bf16=False, bt=B)
    out_f32 = jax.block_until_ready(out_f32)
    assert out_f32.shape == (B, N, OUT_C), out_f32.shape
    assert jnp.allclose(out_f32, ref, rtol=1e-3, atol=1e-3), \
        float(jnp.max(jnp.abs(out_f32 - ref)))

    # Default path: bf16 adjacency in HBM + bf16 L into the MXU, budget-derived
    # bt (>= 2 'parallel' grid steps so v7x's two TensorCores engage).
    out = cheb_conv(graph, x, weight, bias, normalize=True)
    out = jax.block_until_ready(out)
    assert out.shape == (B, N, OUT_C), out.shape
    assert jnp.allclose(out, ref, rtol=1e-1, atol=1e-1), \
        float(jnp.max(jnp.abs(out - ref)))

    print("KERNEL_OK")
</pallas_src>

<mosaic_0001>
module attributes {stable_mosaic.version = 11 : i64} {
  func.func @_cheb_kernel(%arg0: i32, %arg1: memref<2x16x16xf32, #tpu.memory_space<vmem>>, %arg2: memref<2x16x4xf32, #tpu.memory_space<vmem>>, %arg3: memref<16x8xf32, #tpu.memory_space<vmem>>, %arg4: memref<1x8xf32, #tpu.memory_space<vmem>>, %arg5: memref<2x16x8xf32, #tpu.memory_space<vmem>>) attributes {dimension_semantics = [#tpu.dimension_semantics<parallel>], iteration_bounds = array<i64: 1>, scalar_prefetch = 0 : i64, scratch_operands = 0 : i64, tpu.core_type = #tpu.core_type<tc>, window_params = [{transform_indices = @transform_0, window_bounds = array<i64: 2, 16, 16>}, {transform_indices = @transform_1, window_bounds = array<i64: 2, 16, 4>}, {pipeline_mode = #tpu.pipeline_mode<synchronous>, transform_indices = @transform_2, window_bounds = array<i64: 16, 8>}, {pipeline_mode = #tpu.pipeline_mode<synchronous>, transform_indices = @transform_3, window_bounds = array<i64: 1, 8>}, {transform_indices = @transform_4, window_bounds = array<i64: 2, 16, 8>}]} {
    %0 = tpu.iota {dimensions = array<i32: 0>} : vector<16x16xi32>
    %1 = tpu.iota {dimensions = array<i32: 1>} : vector<16x16xi32>
    %2 = arith.cmpi eq, %0, %1 : vector<16x16xi32>
    %c0 = arith.constant 0 : index
    %c0_0 = arith.constant 0 : index
    %c0_1 = arith.constant 0 : index
    %3 = vector.load %arg1[%c0, %c0_0, %c0_1] : memref<2x16x16xf32, #tpu.memory_space<vmem>>, vector<2x16x16xf32>
    %cst = arith.constant dense<0.000000e+00> : vector<2x16xf32>
    %4 = vector.multi_reduction <add>, %3, %cst [2] : vector<2x16x16xf32> to vector<2x16xf32>
    %5 = vector.shape_cast %4 : vector<2x16xf32> to vector<2x16x1xf32>
    %6 = math.rsqrt %5 : vector<2x16x1xf32>
    %7 = arith.cmpf one, %6, %6 : vector<2x16x1xf32>
    %cst_2 = arith.constant 0.000000e+00 : f32
    %8 = vector.broadcast %cst_2 : f32 to vector<2x16x1xf32>
    %9 = arith.select %7, %8, %6 : vector<2x16x1xi1>, vector<2x16x1xf32>
    %10 = vector.broadcast %9 : vector<2x16x1xf32> to vector<2x16x16xf32>
    %11 = arith.mulf %3, %10 : vector<2x16x16xf32>
    %12 = tpu.transpose %9, [0, 2, 1] : vector<2x16x1xf32> -> vector<2x1x16xf32>
    %13 = vector.broadcast %12 : vector<2x1x16xf32> to vector<2x16x16xf32>
    %14 = arith.mulf %11, %13 : vector<2x16x16xf32>
    %cst_3 = arith.constant 1.000000e+00 : f32
    %15 = vector.broadcast %cst_3 : f32 to vector<2x16x16xf32>
    %16 = arith.subf %15, %14 : vector<2x16x16xf32>
    %cst_4 = arith.constant 0.000000e+00 : f32
    %17 = vector.broadcast %cst_4 : f32 to vector<2x16x16xf32>
    %18 = arith.subf %17, %14 : vector<2x16x16xf32>
    %19 = vector.shape_cast %2 : vector<16x16xi1> to vector<1x16x16xi1>
    %20 = vector.broadcast %19 : vector<1x16x16xi1> to vector<2x16x16xi1>
    %21 = arith.select %20, %16, %18 : vector<2x16x16xi1>, vector<2x16x16xf32>
    %22 = arith.cmpf one, %21, %21 : vector<2x16x16xf32>
    %23 = math.absf %21 : vector<2x16x16xf32>
    %cst_5 = arith.constant 0x7F800000 : f32
    %24 = vector.broadcast %cst_5 : f32 to vector<2x16x16xf32>
    %25 = arith.cmpf oeq, %23, %24 : vector<2x16x16xf32>
    %26 = arith.ori %22, %25 : vector<2x16x16xi1>
    %cst_6 = arith.constant 0.000000e+00 : f32
    %27 = vector.broadcast %cst_6 : f32 to vector<2x16x16xf32>
    %28 = arith.select %26, %27, %21 : vector<2x16x16xi1>, vector<2x16x16xf32>
    %c0_7 = arith.constant 0 : index
    %c0_8 = arith.constant 0 : index
    %29 = vector.load %arg3[%c0_7, %c0_8] : memref<16x8xf32, #tpu.memory_space<vmem>>, vector<16x8xf32>
    %c0_9 = arith.constant 0 : index
    %c0_10 = arith.constant 0 : index
    %c0_11 = arith.constant 0 : index
    %30 = vector.load %arg2[%c0_9, %c0_10, %c0_11] : memref<2x16x4xf32, #tpu.memory_space<vmem>>, vector<2x16x4xf32>
    %31 = vector.extract_strided_slice %29 {offsets = [0, 0], sizes = [4, 8], strides = [1, 1]} : vector<16x8xf32> to vector<4x8xf32>
    %32 = vector.shape_cast %30 : vector<2x16x4xf32> to vector<32x4xf32>
    %cst_12 = arith.constant dense<0.000000e+00> : vector<32x8xf32>
    %33 = tpu.matmul %32, %31, %cst_12 {dimension_numbers = #tpu.dot_dimension_numbers<[1], [0], [0], [1], [0, 0, 1, 1], [], []>} : vector<32x4xf32>, vector<4x8xf32>, vector<32x8xf32> -> vector<32x8xf32>
    %34 = vector.shape_cast %33 : vector<32x8xf32> to vector<2x16x8xf32>
    "tpu.trace_start"() <{level = 10 : i32, message = "bij,bjc->bic"}> : () -> ()
    %cst_13 = arith.constant dense<0.000000e+00> : vector<2x16x4xf32>
    %35 = tpu.matmul %28, %30, %cst_13 {dimension_numbers = #tpu.dot_dimension_numbers<[2], [1], [1], [2], [0, 0, 0, 1, 1, 2], [0], [0]>} : vector<2x16x16xf32>, vector<2x16x4xf32>, vector<2x16x4xf32> -> vector<2x16x4xf32>
    "tpu.trace_stop"() : () -> ()
    %36 = vector.extract_strided_slice %29 {offsets = [4, 0], sizes = [4, 8], strides = [1, 1]} : vector<16x8xf32> to vector<4x8xf32>
    %37 = vector.shape_cast %35 : vector<2x16x4xf32> to vector<32x4xf32>
    %cst_14 = arith.constant dense<0.000000e+00> : vector<32x8xf32>
    %38 = tpu.matmul %37, %36, %cst_14 {dimension_numbers = #tpu.dot_dimension_numbers<[1], [0], [0], [1], [0, 0, 1, 1], [], []>} : vector<32x4xf32>, vector<4x8xf32>, vector<32x8xf32> -> vector<32x8xf32>
    %39 = vector.shape_cast %38 : vector<32x8xf32> to vector<2x16x8xf32>
    %40 = arith.addf %34, %39 : vector<2x16x8xf32>
    "tpu.trace_start"() <{level = 10 : i32, message = "bij,bjc->bic"}> : () -> ()
    %cst_15 = arith.constant dense<0.000000e+00> : vector<2x16x4xf32>
    %41 = tpu.matmul %28, %35, %cst_15 {dimension_numbers = #tpu.dot_dimension_numbers<[2], [1], [1], [2], [0, 0, 0, 1, 1, 2], [0], [0]>} : vector<2x16x16xf32>, vector<2x16x4xf32>, vector<2x16x4xf32> -> vector<2x16x4xf32>
    "tpu.trace_stop"() : () -> ()
    %cst_16 = arith.constant 2.000000e+00 : f32
    %42 = vector.broadcast %cst_16 : f32 to vector<2x16x4xf32>
    %43 = arith.mulf %42, %41 : vector<2x16x4xf32>
    %44 = arith.subf %43, %30 : vector<2x16x4xf32>
    %45 = vector.extract_strided_slice %29 {offsets = [8, 0], sizes = [4, 8], strides = [1, 1]} : vector<16x8xf32> to vector<4x8xf32>
    %46 = vector.shape_cast %44 : vector<2x16x4xf32> to vector<32x4xf32>
    %cst_17 = arith.constant dense<0.000000e+00> : vector<32x8xf32>
    %47 = tpu.matmul %46, %45, %cst_17 {dimension_numbers = #tpu.dot_dimension_numbers<[1], [0], [0], [1], [0, 0, 1, 1], [], []>} : vector<32x4xf32>, vector<4x8xf32>, vector<32x8xf32> -> vector<32x8xf32>
    %48 = vector.shape_cast %47 : vector<32x8xf32> to vector<2x16x8xf32>
    %49 = arith.addf %40, %48 : vector<2x16x8xf32>
    "tpu.trace_start"() <{level = 10 : i32, message = "bij,bjc->bic"}> : () -> ()
    %cst_18 = arith.constant dense<0.000000e+00> : vector<2x16x4xf32>
    %50 = tpu.matmul %28, %44, %cst_18 {dimension_numbers = #tpu.dot_dimension_numbers<[2], [1], [1], [2], [0, 0, 0, 1, 1, 2], [0], [0]>} : vector<2x16x16xf32>, vector<2x16x4xf32>, vector<2x16x4xf32> -> vector<2x16x4xf32>
    "tpu.trace_stop"() : () -> ()
    %cst_19 = arith.constant 2.000000e+00 : f32
    %51 = vector.broadcast %cst_19 : f32 to vector<2x16x4xf32>
    %52 = arith.mulf %51, %50 : vector<2x16x4xf32>
    %53 = arith.subf %52, %35 : vector<2x16x4xf32>
    %54 = vector.extract_strided_slice %29 {offsets = [12, 0], sizes = [4, 8], strides = [1, 1]} : vector<16x8xf32> to vector<4x8xf32>
    %55 = vector.shape_cast %53 : vector<2x16x4xf32> to vector<32x4xf32>
    %cst_20 = arith.constant dense<0.000000e+00> : vector<32x8xf32>
    %56 = tpu.matmul %55, %54, %cst_20 {dimension_numbers = #tpu.dot_dimension_numbers<[1], [0], [0], [1], [0, 0, 1, 1], [], []>} : vector<32x4xf32>, vector<4x8xf32>, vector<32x8xf32> -> vector<32x8xf32>
    %57 = vector.shape_cast %56 : vector<32x8xf32> to vector<2x16x8xf32>
    %58 = arith.addf %49, %57 : vector<2x16x8xf32>
    %c0_21 = arith.constant 0 : index
    %c0_22 = arith.constant 0 : index
    %59 = vector.load %arg4[%c0_21, %c0_22] : memref<1x8xf32, #tpu.memory_space<vmem>>, vector<1x8xf32>
    %60 = vector.shape_cast %59 : vector<1x8xf32> to vector<1x1x8xf32>
    %61 = vector.broadcast %60 : vector<1x1x8xf32> to vector<2x16x8xf32>
    %62 = arith.addf %58, %61 : vector<2x16x8xf32>
    %c0_23 = arith.constant 0 : index
    %c0_24 = arith.constant 0 : index
    %c0_25 = arith.constant 0 : index
    %63 = vector.load %arg5[%c0_23, %c0_24, %c0_25] : memref<2x16x8xf32, #tpu.memory_space<vmem>>, vector<2x16x8xf32>
    tpu.vector_store %arg5[%c0_23, %c0_24, %c0_25], %62 {strides = array<i32>} : memref<2x16x8xf32, #tpu.memory_space<vmem>>, vector<2x16x8xf32>,
    return
  }
  func.func @transform_0(%arg0: i32) -> (i32, i32, i32) {
    %c0_i32 = arith.constant 0 : i32
    %c0_i32_0 = arith.constant 0 : i32
    %c0_i32_1 = arith.constant 0 : i32
    return %arg0, %c0_i32, %c0_i32_0 : i32, i32, i32
  }
  func.func @transform_1(%arg0: i32) -> (i32, i32, i32) {
    %c0_i32 = arith.constant 0 : i32
    %c0_i32_0 = arith.constant 0 : i32
    %c0_i32_1 = arith.constant 0 : i32
    return %arg0, %c0_i32, %c0_i32_0 : i32, i32, i32
  }
  func.func @transform_2(%arg0: i32) -> (i32, i32) {
    %c0_i32 = arith.constant 0 : i32
    %c0_i32_0 = arith.constant 0 : i32
    %c0_i32_1 = arith.constant 0 : i32
    return %c0_i32, %c0_i32_0 : i32, i32
  }
  func.func @transform_3(%arg0: i32) -> (i32, i32) {
    %c0_i32 = arith.constant 0 : i32
    %c0_i32_0 = arith.constant 0 : i32
    %c0_i32_1 = arith.constant 0 : i32
    return %c0_i32, %c0_i32_0 : i32, i32
  }
  func.func @transform_4(%arg0: i32) -> (i32, i32, i32) {
    %c0_i32 = arith.constant 0 : i32
    %c0_i32_0 = arith.constant 0 : i32
    %c0_i32_1 = arith.constant 0 : i32
    return %arg0, %c0_i32, %c0_i32_0 : i32, i32, i32
  }
}

</mosaic_0001>

<bundles_post_ra>
// kernel: tpu_custom_call.1
= control target key start
LH: loop header
LB: loop body
LE: loop exit
PB: predicated region body
PF: predicated region fallthrough
CT: control target
= control target key end

     0   :  { %vm28_vm0 = vcmask 130048   ;;  %vm188_vm5 = vcmask 1043456   ;;  %vm175_vm6 = vcmask 31744   ;;  %v17_v27 = vlaneseq  ;;  %s1446_s0 = inlined_call_operand.vmem [shape: f32[2,16,16], index: 0, kind: input, shape index: {}]   ;;  %s1447_s2 = inlined_call_operand.vmem [shape: f32[16,8], index: 2, kind: input, shape index: {}]   ;;  %s1448_s1 = inlined_call_operand.vmem [shape: f32[2,16,4], index: 1, kind: input, shape index: {}]   ;;  %s1449_s3 = inlined_call_operand.vmem [shape: f32[1,8], index: 3, kind: input, shape index: {}]   ;;  %s1450_s4 = inlined_call_operand.vmem [shape: f32[2,16,8], index: 4, kind: output, shape index: {}]  }
   0x1   :  { %v1313_v0 = vld [vmem:[%s1446_s0 + $0x10] sm:$0xff]  ;;  %v1318_v1 = vld [vmem:[%s1446_s0] sm:$0xff]  ;;  %v1323_v2 = vld [vmem:[%s1446_s0 + $0x18] sm:$0xff] }
   0x2   :  { %v35_v3 = vsel %vm28_vm0, %v1313_v0, 0.0  ;;  %v29_v4 = vsel %vm28_vm0, %v1318_v1, 0.0  ;;  %v1332_v5 = vld [vmem:[%s1446_s0 + $0x8] sm:$0xff]  ;;  %v38_v6 = vsel %vm28_vm0, %v1323_v2, 0.0  ;;  %v1341_v20 = vld [vmem:[%s1447_s2] sm:$0xff]  ;;  %v1346_v21 = vld [vmem:[%s1448_s1 + $0x10] sm:$0xff] }
   0x3   :  { %36 = vadd.xlane.f32.xlu1 %v35_v3  ;;  %30 = vadd.xlane.f32.xlu0 %v29_v4  ;;  %v32_v7 = vsel %vm28_vm0, %v1332_v5, 0.0  ;;  %v1351_v22 = vld [vmem:[%s1448_s1 + $0x18] sm:$0xff]  ;;  %v1360_v23 = vld [vmem:[%s1448_s1] sm:$0xff]  ;;  %v1365_v24 = vld [vmem:[%s1448_s1 + $0x8] sm:$0xff]  ;;  %v18_v28 = vshrl.u32 %v17_v27, 7  ;;  %v21_v32 = vand.u32 127, %v17_v27 }
   0x4   :  { %1262 = vmatprep.subr.msk.mxu1 %vm188_vm5, %v1341_v20  ;;  %1169 = vmatprep.mubr.msk.f32.mxu1 %vm175_vm6, %v1346_v21  ;;  %v1238_v25 = vpack.c.bf16 %v1365_v24, %v1360_v23  ;;  %v1242_v26 = vpack.c.bf16 %v1351_v22, %v1346_v21 }
   0x5   :  { %1263 = vmatpush3.msk.msra.mxu1 %vm188_vm5, %v1341_v20  ;;  %1164 = vmatprep.subr.msk.mxu0 %vm188_vm5, %v1341_v20  ;;  %v123_v29 = vsub.s32 0, %v18_v28  ;;  %v19_v30 = vadd.s32 8, %v18_v28  ;;  %vm22_vm7 = vcmp.eq.s32.totalorder %v18_v28, %v21_v32 }
   0x6   :  { %1170 = vmatmul.mubr.msk.f32.vlgmr.msra.gmra.mrb[0].mxu1 %vm175_vm6, %v1351_v22  ;;  %1165 = vmatpush3.msk.msra.mxu0 %vm188_vm5, %v1341_v20 }
   0x7   :  { %39 = vadd.xlane.f32.xlu1 %v38_v6  ;;  %33 = vadd.xlane.f32.xlu0 %v32_v7  ;;  %vm23_vm8 = vcmp.eq.s32.totalorder %v19_v30, %v21_v32 }
   0x8   :  { %1239 = vmatprep.subr.bf16.mxu1 %v1238_v25  ;;  %1166 = vmatprep.mubr.msk.f32.mxu0 %vm175_vm6, %v1360_v23 }
   0x9   :  { %1241 = vmatpush3.bf16.msra.mxu1 %v1238_v25  ;;  %1167 = vmatmul.mubr.msk.f32.vlgmr.msra.gmra.mrb[0].mxu0 %vm175_vm6, %v1365_v24 }
   0xa   :  { %1243 = vmatprep.subr.bf16.mxu1 %v1242_v26 }
  0x90   :  { %v37_v8 = vpop.xlane.xlu1 %36  ;;  %v31_v9 = vpop.xlane.xlu0 %30 }
  0x91   :  { %1277 = vrsqrt.f32 %v37_v8 }
  0x92   :  { %1279 = vrsqrt.f32 %v31_v9  ;;  %v170_v9 = vld [vmem:[%s1447_s2 + $0x8] sm:$0xff] }
  0x94   :  { %v40_v10 = vpop.xlane.xlu1 %39  ;;  %v34_v11 = vpop.xlane.xlu0 %33 }
  0x95   :  { %1281 = vrsqrt.f32 %v40_v10  ;;  %v963_v10 = vrot.slane %v170_v9, 4 }
  0x96   :  { %1283 = vrsqrt.f32 %v34_v11 }
  0x9b   :  { %v1278_v12 = vpop.eup %1277 }
  0x9c   :  { %v1280_v13 = vpop.eup %1279  ;;  %vm47_vm1 = vcmp.ne.f32.partialorder %v1278_v12, %v1278_v12 }
  0x9d   :  { %v51_v14 = vsel %vm47_vm1, 0.0, %v1278_v12  ;;  %vm45_vm2 = vcmp.ne.f32.partialorder %v1280_v13, %v1280_v13 }
  0x9e   :  { %89 = vxpose.xlu1.b32.start [1/2] (short) (narrow) %v51_v14, 8  ;;  %v49_v15 = vsel %vm45_vm2, 0.0, %v1280_v13  ;;  %v55_v33 = vmul.f32 %v51_v14, %v1313_v0 }
  0x9f   :  { %v1282_v16 = vpop.eup %1281  ;;  %57 = vxpose.xlu0.b32.start [1/2] (short) (narrow) %v49_v15, 8  ;;  %v53_v37 = vmul.f32 %v49_v15, %v1318_v1 }
  0xa0   :  { %v1284_v17 = vpop.eup %1283  ;;  %vm48_vm3 = vcmp.ne.f32.partialorder %v1282_v16, %v1282_v16 }
  0xa1   :  { %v52_v18 = vsel %vm48_vm3, 0.0, %v1282_v16  ;;  %vm46_vm4 = vcmp.ne.f32.partialorder %v1284_v17, %v1284_v17 }
  0xa2   :  { %90 = vxpose.xlu1.b32.end [2/2] (short) (narrow) %v52_v18, 8  ;;  %v50_v19 = vsel %vm46_vm4, 0.0, %v1284_v17  ;;  %v56_v34 = vmul.f32 %v52_v18, %v1323_v2  ;;  %v439_v2 = vrot.slane %v1341_v20, 4 }
  0xa3   :  { %58 = vxpose.xlu0.b32.end [2/2] (short) (narrow) %v50_v19, 8  ;;  %v54_v38 = vmul.f32 %v50_v19, %v1332_v5 }
  0xa4   :  { %1186 = vmatprep.subr.msk.mxu0 %vm188_vm5, %v439_v2 }
  0xa5   :  { %1187 = vmatpush3.msk.msra.mxu0 %vm188_vm5, %v439_v2 }
  0xa6   :  { %1208 = vmatprep.subr.msk.mxu0 %vm188_vm5, %v170_v9 }
  0xd9   :  { %v1392_v0 = vpop.f32.mrb[0].mxu1 }
  0xda   :  { %v1394_v1 = vpop.f32.mrb[1].mxu1 }
 0x11e   :  { %v105_v31 = vpop.trf.xlu1 }
 0x11f   :  { %v128_v35 = vrot.slane %v105_v31, %v123_v29  ;;  %v73_v36 = vpop.trf.xlu0 }
 0x120   :  { %v124_v39 = vrot.slane %v73_v36, %v123_v29 }
 0x121   :  { %v131_v40 = vmul.f32 %v128_v35, %v55_v33  ;;  %v132_v41 = vmul.f32 %v128_v35, %v56_v34 }
 0x122   :  { %v129_v42 = vmul.f32 %v124_v39, %v53_v37  ;;  %v130_v43 = vmul.f32 %v124_v39, %v54_v38  ;;  %v1119_v37 = vld [vmem:[%s1449_s3] ss:$0 sm:$0xff] }
 0x123   :  { %v135_v44 = vsub.f32 1.0, %v131_v40  ;;  %v136_v45 = vsub.f32 1.0, %v132_v41  ;;  %v139_v46 = vsub.f32 0.0, %v131_v40  ;;  %v140_v47 = vsub.f32 0.0, %v132_v41 }
 0x124   :  { %v133_v48 = vsub.f32 1.0, %v129_v42  ;;  %v134_v49 = vsub.f32 1.0, %v130_v43  ;;  %v137_v50 = vsub.f32 0.0, %v129_v42  ;;  %v138_v51 = vsub.f32 0.0, %v130_v43 }
 0x125   :  { %v147_v52 = vsel %vm22_vm7, %v135_v44, %v139_v46  ;;  %v148_v53 = vsel %vm23_vm8, %v136_v45, %v140_v47 }
 0x126   :  { %v145_v54 = vsel %vm22_vm7, %v133_v48, %v137_v50  ;;  %v146_v55 = vsel %vm23_vm8, %v134_v49, %v138_v51  ;;  %v155_v56 = vand.u32 2147483647, %v147_v52  ;;  %vm151_vm9 = vcmp.ne.f32.partialorder %v147_v52, %v147_v52 }
 0x127   :  { %v153_v57 = vand.u32 2147483647, %v145_v54  ;;  %v154_v58 = vand.u32 2147483647, %v146_v55  ;;  %v156_v59 = vand.u32 2147483647, %v148_v53  ;;  %vm149_vm11 = vcmp.ne.f32.partialorder %v145_v54, %v145_v54 }
 0x128   :  { %vm159_vm10 = vcmp.eq.f32.partialorder %v155_v56, inf  ;;  %vm150_vm1 = vcmp.ne.f32.partialorder %v146_v55, %v146_v55  ;;  %vm152_vm4 = vcmp.ne.f32.partialorder %v148_v53, %v148_v53 }
 0x129   :  { %vm157_vm12 = vcmp.eq.f32.partialorder %v153_v57, inf  ;;  %vm158_vm13 = vcmp.eq.f32.partialorder %v154_v58, inf  ;;  %vm163_vm14 = vmor %vm151_vm9, %vm159_vm10  ;;  %vm160_vm2 = vcmp.eq.f32.partialorder %v156_v59, inf }
 0x12a   :  { %vm161_vm15 = vmor %vm149_vm11, %vm157_vm12  ;;  %v167_v62 = vsel %vm163_vm14, 0.0, %v147_v52 }
 0x12b   :  { %v165_v60 = vsel %vm161_vm15, 0.0, %v145_v54  ;;  %vm162_vm3 = vmor %vm150_vm1, %vm158_vm13 }
 0x12c   :  { %1176 = vmatprep.mubr.msk.f32.mxu1 %vm28_vm0, %v165_v60  ;;  %v166_v61 = vsel %vm162_vm3, 0.0, %v146_v55  ;;  %vm164_vm7 = vmor %vm152_vm4, %vm160_vm2 }
 0x12d   :  { %1177 = vmatmul.mubr.msk.f32.vlgmr.msra.gmra.mrb[2].mxu1 %vm28_vm0, %v166_v61  ;;  %v168_v63 = vsel %vm164_vm7, 0.0, %v148_v53 }
 0x12e   :  { %1245 = vmatpush3.bf16.msra.mxu1 %v1242_v26  ;;  %1183 = vmatprep.mubr.msk.f32.mxu1 %vm28_vm0, %v167_v62 }
 0x131   :  { %1184 = vmatmul.mubr.msk.f32.vlgmr.msra.gmra.mrb[4].mxu1 %vm28_vm0, %v168_v63 }
 0x132   :  { %1198 = vmatprep.mubr.msk.f32.mxu1 %vm28_vm0, %v165_v60 }
 0x200   :  { %v1178_v3 = vpop.f32.mrb[2].mxu1 }
 0x201   :  { %v349_v4 = vpop.f32.mrb[3].mxu1 }
 0x202   :  { %v1246_v5 = vpack.c.bf16 %v1178_v3, %v349_v4  ;;  %1188 = vmatprep.mubr.msk.f32.mxu0 %vm175_vm6, %v349_v4 }
 0x203   :  { %1189 = vmatmul.mubr.msk.f32.vlgmr.msra.gmra.mrb[0].mxu0 %vm175_vm6, %v1178_v3 }
 0x204   :  { %v1185_v6 = vpop.f32.mrb[4].mxu1  ;;  %1247 = vmatprep.subr.bf16.mxu1 %v1246_v5  ;;  %1209 = vmatpush3.msk.msra.mxu0 %vm188_vm5, %v170_v9 }
 0x205   :  { %v430_v7 = vpop.f32.mrb[5].mxu1  ;;  %1249 = vmatpush3.bf16.msra.mxu1 %v1246_v5  ;;  %1230 = vmatprep.subr.msk.mxu0 %vm188_vm5, %v963_v10 }
 0x206   :  { %v1250_v8 = vpack.c.bf16 %v1185_v6, %v430_v7  ;;  %1191 = vmatprep.mubr.msk.f32.mxu0 %vm175_vm6, %v430_v7 }
 0x207   :  { %1192 = vmatmul.mubr.msk.f32.gmra.mrb[2].mxu0 %vm175_vm6, %v1185_v6 }
 0x208   :  { %1199 = vmatmul.mubr.msk.f32.vlgmr.msra.gmra.mrb[6].mxu1 %vm28_vm0, %v166_v61  ;;  %1251 = vmatprep.subr.bf16.mxu1 %v1250_v8 }
 0x209   :  { %1253 = vmatpush3.bf16.msra.mxu1 %v1250_v8  ;;  %1205 = vmatprep.mubr.msk.f32.mxu1 %vm28_vm0, %v167_v62 }
 0x20c   :  { %1206 = vmatmul.mubr.msk.f32.vlgmr.msra.gmra.mrb[8].mxu1 %vm28_vm0, %v168_v63 }
 0x20d   :  { %1220 = vmatprep.mubr.msk.f32.mxu1 %vm28_vm0, %v165_v60 }
 0x2db   :  { %v1200_v11 = vpop.f32.mrb[6].mxu1 }
 0x2dc   :  { %v694_v12 = vmul.f32 2.0, %v1200_v11  ;;  %v609_v13 = vpop.f32.mrb[7].mxu1 }
 0x2dd   :  { %v693_v14 = vmul.f32 2.0, %v609_v13 }
 0x2de   :  { %v698_v15 = vsub.f32 %v694_v12, %v1365_v24 }
 0x2df   :  { %v697_v16 = vsub.f32 %v693_v14, %v1360_v23  ;;  %v1207_v17 = vpop.f32.mrb[8].mxu1 }
 0x2e0   :  { %v696_v18 = vmul.f32 2.0, %v1207_v17  ;;  %v684_v19 = vpop.f32.mrb[9].mxu1 }
 0x2e1   :  { %v695_v20 = vmul.f32 2.0, %v684_v19  ;;  %1210 = vmatprep.mubr.msk.f32.mxu0 %vm175_vm6, %v697_v16  ;;  %v1254_v25 = vpack.c.bf16 %v698_v15, %v697_v16 }
 0x2e2   :  { %v700_v26 = vsub.f32 %v696_v18, %v1351_v22  ;;  %1211 = vmatmul.mubr.msk.f32.vlgmr.msra.gmra.mrb[0].mxu0 %vm175_vm6, %v698_v15 }
 0x2e3   :  { %v699_v27 = vsub.f32 %v695_v20, %v1346_v21  ;;  %1255 = vmatprep.subr.bf16.mxu1 %v1254_v25  ;;  %1231 = vmatpush3.msk.msra.mxu0 %vm188_vm5, %v963_v10 }
 0x2e4   :  { %1257 = vmatpush3.bf16.msra.mxu1 %v1254_v25 }
 0x2e5   :  { %1213 = vmatprep.mubr.msk.f32.mxu0 %vm175_vm6, %v699_v27  ;;  %v1258_v23 = vpack.c.bf16 %v700_v26, %v699_v27 }
 0x2e6   :  { %1214 = vmatmul.mubr.msk.f32.gmra.mrb[2].mxu0 %vm175_vm6, %v700_v26 }
 0x2e7   :  { %1221 = vmatmul.mubr.msk.f32.vlgmr.msra.gmra.mrb[10].mxu1 %vm28_vm0, %v166_v61  ;;  %1259 = vmatprep.subr.bf16.mxu1 %v1258_v23 }
 0x2e8   :  { %1261 = vmatpush3.bf16.msra.mxu1 %v1258_v23  ;;  %1227 = vmatprep.mubr.msk.f32.mxu1 %vm28_vm0, %v167_v62 }
 0x2eb   :  { %1228 = vmatmul.mubr.msk.f32.vlgmr.msra.gmra.mrb[12].mxu1 %vm28_vm0, %v168_v63  ;;  %vm1078_vm0 = vcmask 64512  }
 0x3ba   :  { %v1222_v22 = vpop.f32.mrb[10].mxu1 }
 0x3bb   :  { %v956_v24 = vmul.f32 2.0, %v1222_v22  ;;  %v871_v21 = vpop.f32.mrb[11].mxu1 }
 0x3bc   :  { %v955_v28 = vmul.f32 2.0, %v871_v21 }
 0x3bd   :  { %v960_v29 = vsub.f32 %v956_v24, %v1178_v3 }
 0x3be   :  { %v959_v30 = vsub.f32 %v955_v28, %v349_v4  ;;  %v1229_v31 = vpop.f32.mrb[12].mxu1 }
 0x3bf   :  { %v958_v32 = vmul.f32 2.0, %v1229_v31  ;;  %v946_v33 = vpop.f32.mrb[13].mxu1 }
 0x3c0   :  { %v957_v34 = vmul.f32 2.0, %v946_v33  ;;  %1232 = vmatprep.mubr.msk.f32.mxu0 %vm175_vm6, %v959_v30 }
 0x3c1   :  { %v962_v35 = vsub.f32 %v958_v32, %v1185_v6  ;;  %1233 = vmatmul.mubr.msk.f32.vlgmr.msra.gmra.mrb[0].mxu0 %vm175_vm6, %v960_v29 }
 0x3c2   :  { %v961_v36 = vsub.f32 %v957_v34, %v430_v7 }
 0x3c4   :  { %1235 = vmatprep.mubr.msk.f32.mxu0 %vm175_vm6, %v961_v36 }
 0x3c5   :  { %1236 = vmatmul.mubr.msk.f32.gmra.mrb[2].mxu0 %vm175_vm6, %v962_v35 }
 0x494   :  { %v1234_v38 = vpop.f32.mrb[0].mxu0 }
 0x495   :  { %v1075_v39 = vadd.f32 %v1234_v38, %v1119_v37  ;;  %v1044_v40 = vpop.f32.mrb[1].mxu0 }
 0x496   :  { %v1074_v41 = vadd.f32 %v1119_v37, %v1044_v40 }
 0x497   :  { %1080 = vst.msk [vmem:[%s1450_s4 + $0x8] sm:$0xff] %vm1078_vm0, %v1075_v39 }
 0x498   :  { %1079 = vst.msk [vmem:[%s1450_s4] sm:$0xff] %vm1078_vm0, %v1074_v41  ;;  %v1237_v42 = vpop.f32.mrb[2].mxu0 }
 0x499   :  { %v1264_v43 = vadd.f32 %v1237_v42, %v1392_v0  ;;  %v1054_v44 = vpop.f32.mrb[3].mxu0 }
 0x49a   :  { %v1265_v45 = vadd.f32 %v1054_v44, %v1394_v1 }
 0x49b   :  { %v1077_v46 = vadd.f32 %v1264_v43, %v1119_v37 }
 0x49c   :  { %v1076_v47 = vadd.f32 %v1265_v45, %v1119_v37 }
 0x49d   :  { %1082 = vst.msk [vmem:[%s1450_s4 + $0x18] sm:$0xff] %vm1078_vm0, %v1077_v46 }
 0x49e   :  { %1081 = vst.msk [vmem:[%s1450_s4 + $0x10] sm:$0xff] %vm1078_vm0, %v1076_v47 }

</bundles_post_ra>
